<compile_context>
chip_gen: v7x
topology: tpu7x:2x2x1
jax: 0.10.0
libtpu: 0.0.40
codegen_flags: <defaults>
</compile_context>

<pallas_src>
import functools

import jax
import jax.numpy as jnp
from jax import lax
from jax.experimental import pallas as pl
from jax.experimental.pallas import tpu as pltpu

LN_EPS = 1e-5          # nn.LayerNorm default
LEAKY_SLOPE = 0.2      # nn.LeakyReLU(0.2)


def _round_up(x, m):
    return ((x + m - 1) // m) * m


# --------------------------------------------------------------------------------------------
# Fused epilogue: centered LayerNorm over the real feature count, then LeakyReLU(0.2).
# Padded lanes of h are exactly zero (W columns / bias are zero there); when out_dim != d_pad the
# centered residual on padded lanes would be -mean, so those lanes are zeroed before the sum-sq.
# Padded output lanes end up as exactly 0 (gamma = beta = 0 there) and are sliced off outside.
# --------------------------------------------------------------------------------------------
def _ln_leaky(h, g, beta, d_real, d_pad):
    inv_d = 1.0 / d_real
    mean = jnp.sum(h, axis=-1, keepdims=True) * inv_d
    hc = h - mean
    if d_pad != d_real:
        lane_ok = lax.broadcasted_iota(jnp.int32, (1, d_pad), 1) < d_real
        hc = jnp.where(lane_ok, hc, 0.0)
    var = jnp.sum(hc * hc, axis=-1, keepdims=True) * inv_d
    inv_std = lax.rsqrt(var + LN_EPS)          # EUP slot -> effectively free
    y = hc * inv_std * g + beta
    return jnp.maximum(y, LEAKY_SLOPE * y)     # LeakyReLU(0.2), slope < 1


# --------------------------------------------------------------------------------------------
# Kernels.
# --------------------------------------------------------------------------------------------
def _fc_ln_kernel(x_ref, w_ref, b_ref, *rest, d_real, d_pad, use_mask):
    """Resident-W path: grid = (row_tiles,)."""
    if use_mask:
        m_ref, g_ref, beta_ref, o_ref = rest
    else:
        g_ref, beta_ref, o_ref = rest
    a = x_ref[...].astype(w_ref.dtype)                      # on-chip cast (no wrapper HBM pass)
    h = jnp.dot(a, w_ref[...], preferred_element_type=jnp.float32) + b_ref[...]
    if use_mask:
        h = h * m_ref[...]                                  # [rows, 1] broadcast over lanes
    o_ref[...] = _ln_leaky(h, g_ref[...], beta_ref[...], d_real, d_pad).astype(o_ref.dtype)


def _fc_ln_kernel_ktiled(x_ref, w_ref, b_ref, *rest, d_real, d_pad, use_mask):
    """K-tiled fallback: grid = (row_tiles, k_tiles), f32 accumulator scratch, LN in last-k."""
    if use_mask:
        m_ref, g_ref, beta_ref, o_ref, acc_ref = rest
    else:
        g_ref, beta_ref, o_ref, acc_ref = rest
    k = pl.program_id(1)

    @pl.when(k == 0)
    def _():
        acc_ref[...] = jnp.zeros_like(acc_ref)

    a = x_ref[...].astype(w_ref.dtype)
    acc_ref[...] += jnp.dot(a, w_ref[...], preferred_element_type=jnp.float32)

    @pl.when(k == pl.num_programs(1) - 1)
    def _():
        h = acc_ref[...] + b_ref[...]
        if use_mask:
            h = h * m_ref[...]
        o_ref[...] = _ln_leaky(h, g_ref[...], beta_ref[...], d_real, d_pad).astype(o_ref.dtype)


# --------------------------------------------------------------------------------------------
# One-time parameter prep (do this at init, not per call).
# --------------------------------------------------------------------------------------------
def prepare_params(weight, bias, gamma, beta, *, mxu_dtype=jnp.bfloat16):
    """weight: [out_dim, in_dim] (PyTorch layout); bias/gamma/beta: [out_dim].

    Returns padded, pre-transposed parameters: W as [in_dim_pad, out_dim_pad] in mxu_dtype
    (bf16 by default — native MXU dtype, half the W DMA bytes); bias/gamma/beta as lane-dense
    [1, out_dim_pad] f32 rows (padding is zero).
    """
    out_dim, in_dim = weight.shape
    d_in = _round_up(in_dim, 128)
    d_out = _round_up(out_dim, 128)

    w_t = jnp.zeros((d_in, d_out), jnp.float32).at[:in_dim, :out_dim].set(
        weight.T.astype(jnp.float32)).astype(mxu_dtype)

    def pad_row(v):
        return jnp.zeros((1, d_out), jnp.float32).at[0, :out_dim].set(v.astype(jnp.float32))

    return {
        "w_t": w_t,
        "b": pad_row(bias),
        "g": pad_row(gamma),
        "beta": pad_row(beta),
        "in_dim": in_dim,
        "out_dim": out_dim,
        "mxu_dtype": mxu_dtype,
    }


# --------------------------------------------------------------------------------------------
# VMEM-budget-driven tiling plan.
# --------------------------------------------------------------------------------------------
def _vmem_capacity_bytes():
    try:
        info = pltpu.get_tpu_info()
        cap = getattr(info, "vmem_capacity_bytes", None)
        if cap:
            return int(cap)
    except Exception:
        pass
    return 64 * 1024 * 1024  # conservative (v7x per-TC physical)


def _plan_tiling(n_rows, d_in, d_out, x_bytes, mxu_bytes, out_bytes, use_mask,
                 row_tile_req=None, force_k_tile=None):
    cap = _vmem_capacity_bytes()
    vmem_limit = min((cap * 3) // 4, 96 * 1024 * 1024)      # ~48 MiB on v7x, up to 96 on v5e/v6e
    budget = vmem_limit - 4 * 1024 * 1024                   # headroom for compiler scratch
    sub = 16 if mxu_bytes < 4 else 8                        # bf16 (16,128) vs f32 (8,128) packing
    if row_tile_req is None:
        row_tile_req = 1024 if cap >= 100 * 1024 * 1024 else 512
    rt_max = max(sub, min(_round_up(row_tile_req, sub), _round_up(max(n_rows, 1), sub)))

    def usage(rt, kt, k_tiled):
        u = 2 * kt * d_out * mxu_bytes                      # weight tiles (double-buffered)
        u += 2 * rt * kt * x_bytes                          # x tiles
        u += 2 * rt * d_out * out_bytes                     # output tiles
        u += 6 * d_out * 4                                  # bias / gamma / beta (x2 buffers)
        if use_mask:
            u += 2 * rt * 128 * 4                           # mask column (lane-padded in VMEM)
        if k_tiled:
            u += rt * d_out * 4                             # f32 accumulator scratch
        return u

    def best_rt(kt, k_tiled):
        rt = rt_max
        while rt >= sub:
            if usage(rt, kt, k_tiled) <= budget:
                return rt
            rt -= sub
        return None

    if force_k_tile is None:
        rt = best_rt(d_in, k_tiled=False)
        if rt is not None:
            return rt, None, vmem_limit
        k_candidates = [kt for kt in (1024, 512, 256, 128) if kt < d_in and d_in % kt == 0]
    else:
        k_candidates = [force_k_tile]

    for kt in k_candidates:
        rt = best_rt(kt, k_tiled=True)
        if rt is not None:
            return rt, kt, vmem_limit
    # Last resort: smallest tiles; raise the scoped limit toward physical.
    return sub, (128 if d_in > 128 else None), min(cap - 2 * 1024 * 1024, 100 * 1024 * 1024)


def _snap_to_divisor(rt, n_rows, sub):
    """Prefer a nearby row_tile that divides n_rows so no row padding / no wrapper pad pass."""
    if rt <= 0 or n_rows % rt == 0:
        return rt
    c = rt
    lo = max(sub, rt // 2)
    while c >= lo:
        if n_rows % c == 0:
            return c
        c -= sub
    return rt


# --------------------------------------------------------------------------------------------
# Public wrapper.
# --------------------------------------------------------------------------------------------
def masked_fc_block_ln(x, mask, params, *, train=True, row_tile=None, out_dtype=None,
                       _force_k_tile=None):
    """x: [B, S, in_dim]; mask: [B, S] (0/1, padding mask), applied only if train=True.

    params: output of prepare_params(). Returns [B, S, out_dim] in out_dtype (default x.dtype;
    pass jnp.bfloat16 to halve output writeback when the consumer accepts it).
    """
    B, S, in_dim = x.shape
    assert in_dim == params["in_dim"]
    out_dim = params["out_dim"]
    w_t, b2, g2, be2 = params["w_t"], params["b"], params["g"], params["beta"]
    d_in, d_out = w_t.shape
    mxu_dtype = params["mxu_dtype"]
    out_dtype = x.dtype if out_dtype is None else out_dtype

    N = B * S
    use_mask = bool(train)

    need_feat_pad = (in_dim != d_in)
    mxu_bytes = jnp.dtype(mxu_dtype).itemsize
    x_bytes = mxu_bytes if need_feat_pad else jnp.dtype(x.dtype).itemsize
    out_bytes = jnp.dtype(out_dtype).itemsize

    rt, kt, vmem_limit = _plan_tiling(N, d_in, d_out, x_bytes, mxu_bytes, out_bytes, use_mask,
                                      row_tile_req=row_tile, force_k_tile=_force_k_tile)
    sub = 16 if mxu_bytes < 4 else 8
    rt = _snap_to_divisor(rt, N, sub)
    n_pad = _round_up(N, rt)
    if kt is not None:
        assert d_in % kt == 0, "k_tile must divide the padded in_dim"

    need_row_pad = (n_pad != N)
    x_flat = x.reshape(N, in_dim)
    if need_feat_pad or need_row_pad:
        # Single fused pad+cast XLA pass, only when the shapes genuinely require it.
        x2 = jnp.zeros((n_pad, d_in), mxu_dtype).at[:N, :in_dim].set(x_flat.astype(mxu_dtype))
    else:
        x2 = x_flat                       # no wrapper HBM pass; cast to MXU dtype happens in-kernel

    if use_mask:
        m_flat = mask.reshape(N).astype(jnp.float32)
        if need_row_pad:
            m2 = jnp.zeros((n_pad, 1), jnp.float32).at[:N, 0].set(m_flat)
        else:
            m2 = m_flat.reshape(N, 1)

    # Advisory cost estimate so XLA schedules surrounding ops around the kernel.
    bytes_accessed = (x2.size * x2.dtype.itemsize + w_t.size * w_t.dtype.itemsize
                      + n_pad * d_out * out_bytes + 3 * d_out * 4
                      + (n_pad * 4 if use_mask else 0))
    cost = pl.CostEstimate(flops=2 * N * in_dim * out_dim, transcendentals=N,
                           bytes_accessed=int(bytes_accessed))

    compiler_params = pltpu.CompilerParams(
        dimension_semantics=("parallel",) if kt is None else ("parallel", "arbitrary"),
        vmem_limit_bytes=int(vmem_limit),
    )

    if kt is None:
        grid = (n_pad // rt,)
        x_spec = pl.BlockSpec((rt, d_in), lambda i: (i, 0))
        w_spec = pl.BlockSpec((d_in, d_out), lambda i: (0, 0))      # constant index -> resident
        row_spec = pl.BlockSpec((1, d_out), lambda i: (0, 0))
        m_spec = pl.BlockSpec((rt, 1), lambda i: (i, 0))
        o_spec = pl.BlockSpec((rt, d_out), lambda i: (i, 0))
        scratch = []
        kernel = functools.partial(_fc_ln_kernel, d_real=out_dim, d_pad=d_out, use_mask=use_mask)
    else:
        grid = (n_pad // rt, d_in // kt)
        x_spec = pl.BlockSpec((rt, kt), lambda i, k: (i, k))
        w_spec = pl.BlockSpec((kt, d_out), lambda i, k: (k, 0))
        row_spec = pl.BlockSpec((1, d_out), lambda i, k: (0, 0))
        m_spec = pl.BlockSpec((rt, 1), lambda i, k: (i, 0))
        o_spec = pl.BlockSpec((rt, d_out), lambda i, k: (i, 0))
        scratch = [pltpu.VMEM((rt, d_out), jnp.float32)]
        kernel = functools.partial(_fc_ln_kernel_ktiled, d_real=out_dim, d_pad=d_out,
                                   use_mask=use_mask)

    if use_mask:
        in_specs = [x_spec, w_spec, row_spec, m_spec, row_spec, row_spec]
        args = (x2, w_t, b2, m2, g2, be2)
    else:
        in_specs = [x_spec, w_spec, row_spec, row_spec, row_spec]
        args = (x2, w_t, b2, g2, be2)

    out = pl.pallas_call(
        kernel,
        out_shape=jax.ShapeDtypeStruct((n_pad, d_out), out_dtype),
        grid_spec=pltpu.PrefetchScalarGridSpec(
            num_scalar_prefetch=0,
            grid=grid,
            in_specs=in_specs,
            out_specs=o_spec,
            scratch_shapes=scratch,
        ),
        compiler_params=compiler_params,
        cost_estimate=cost,
    )(*args)

    if n_pad != N or d_out != out_dim:
        out = out[:N, :out_dim]
    return out.reshape(B, S, out_dim)


# --------------------------------------------------------------------------------------------
# Pure-JAX reference (mirrors the PyTorch module forward).
# --------------------------------------------------------------------------------------------
def reference(x, mask, weight, bias, gamma, beta, train=True):
    h = jnp.einsum("bsi,oi->bso", x, weight) + bias
    if train:
        h = h * mask[..., None]
    mean = h.mean(-1, keepdims=True)
    var = ((h - mean) ** 2).mean(-1, keepdims=True)
    y = (h - mean) / jnp.sqrt(var + LN_EPS) * gamma + beta
    return jnp.where(y > 0, y, LEAKY_SLOPE * y)


if __name__ == "__main__":
    key = jax.random.PRNGKey(0)

    def make_case(k, B, S, in_dim, out_dim):
        kx, kw, kb, kg, kbe, km = jax.random.split(k, 6)
        x = jax.random.normal(kx, (B, S, in_dim), dtype=jnp.float32)
        bound = 1.0 / (in_dim ** 0.5)
        weight = jax.random.uniform(kw, (out_dim, in_dim), minval=-bound, maxval=bound,
                                    dtype=jnp.float32)
        bias = jax.random.uniform(kb, (out_dim,), minval=-bound, maxval=bound, dtype=jnp.float32)
        gamma = jnp.ones((out_dim,), jnp.float32)     # nn.LayerNorm default weight
        beta = jnp.zeros((out_dim,), jnp.float32)     # nn.LayerNorm default bias
        mask = (jax.random.uniform(km, (B, S)) > 0.3).astype(jnp.float32)
        return x, weight, bias, gamma, beta, mask

    k1, k2 = jax.random.split(key)

    # Case 1: small layer (module-typical shapes), f32 MXU path -> tight check, train & eval.
    B, S, in_dim, out_dim = 2, 8, 32, 32
    x, w, b, g, be, m = make_case(k1, B, S, in_dim, out_dim)
    params_f32 = prepare_params(w, b, g, be, mxu_dtype=jnp.float32)

    out = jax.block_until_ready(masked_fc_block_ln(x, m, params_f32, train=True))
    ref = reference(x, m, w, b, g, be, train=True)
    assert out.shape == (B, S, out_dim)
    assert jnp.allclose(out, ref, atol=1e-5, rtol=1e-5), "mismatch vs reference (train=True, f32)"

    out_eval = jax.block_until_ready(masked_fc_block_ln(x, m, params_f32, train=False))
    ref_eval = reference(x, m, w, b, g, be, train=False)
    assert jnp.allclose(out_eval, ref_eval, atol=1e-5, rtol=1e-5), "mismatch (train=False, f32)"

    # Case 1b: default bf16 MXU path; compare against a reference fed bf16-rounded operands.
    params_bf16 = prepare_params(w, b, g, be)  # bf16 default
    out_bf16 = jax.block_until_ready(masked_fc_block_ln(x, m, params_bf16, train=True))
    ref_bf16 = reference(x.astype(jnp.bfloat16).astype(jnp.float32), m,
                         w.astype(jnp.bfloat16).astype(jnp.float32), b, g, be, train=True)
    assert jnp.allclose(out_bf16, ref_bf16, atol=1e-3, rtol=1e-3), "mismatch (bf16 MXU path)"

    # Case 2: 128-aligned dims (exercises the no-pad fast path) + forced K-tiled grid (2 k-steps).
    B2, S2, in2, out2 = 2, 8, 256, 128
    x2_, w2, b2_, g2_, be2_, m2_ = make_case(k2, B2, S2, in2, out2)
    params2 = prepare_params(w2, b2_, g2_, be2_, mxu_dtype=jnp.float32)
    out_k = jax.block_until_ready(
        masked_fc_block_ln(x2_, m2_, params2, train=True, _force_k_tile=128))
    ref_k = reference(x2_, m2_, w2, b2_, g2_, be2_, train=True)
    assert out_k.shape == (B2, S2, out2)
    assert jnp.allclose(out_k, ref_k, atol=1e-4, rtol=1e-4), "mismatch (K-tiled path)"

    print("KERNEL_OK")
</pallas_src>

<mosaic_0001>
module attributes {stable_mosaic.version = 11 : i64} {
  func.func @_fc_ln_kernel(%arg0: i32, %arg1: memref<16x128xf32, #tpu.memory_space<vmem>>, %arg2: memref<128x128xf32, #tpu.memory_space<vmem>>, %arg3: memref<1x128xf32, #tpu.memory_space<vmem>>, %arg4: memref<16x1xf32, #tpu.memory_space<vmem>>, %arg5: memref<1x128xf32, #tpu.memory_space<vmem>>, %arg6: memref<1x128xf32, #tpu.memory_space<vmem>>, %arg7: memref<16x128xf32, #tpu.memory_space<vmem>>) attributes {dimension_semantics = [#tpu.dimension_semantics<parallel>], iteration_bounds = array<i64: 1>, scalar_prefetch = 0 : i64, scratch_operands = 0 : i64, tpu.core_type = #tpu.core_type<tc>, window_params = [{transform_indices = @transform_0, window_bounds = array<i64: 16, 128>}, {pipeline_mode = #tpu.pipeline_mode<synchronous>, transform_indices = @transform_1, window_bounds = array<i64: 128, 128>}, {pipeline_mode = #tpu.pipeline_mode<synchronous>, transform_indices = @transform_2, window_bounds = array<i64: 1, 128>}, {transform_indices = @transform_3, window_bounds = array<i64: 16, 1>}, {pipeline_mode = #tpu.pipeline_mode<synchronous>, transform_indices = @transform_4, window_bounds = array<i64: 1, 128>}, {pipeline_mode = #tpu.pipeline_mode<synchronous>, transform_indices = @transform_5, window_bounds = array<i64: 1, 128>}, {transform_indices = @transform_6, window_bounds = array<i64: 16, 128>}]} {
    %c0 = arith.constant 0 : index
    %c0_0 = arith.constant 0 : index
    %0 = vector.load %arg1[%c0, %c0_0] : memref<16x128xf32, #tpu.memory_space<vmem>>, vector<16x128xf32>
    %c0_1 = arith.constant 0 : index
    %c0_2 = arith.constant 0 : index
    %1 = vector.load %arg2[%c0_1, %c0_2] : memref<128x128xf32, #tpu.memory_space<vmem>>, vector<128x128xf32>
    %cst = arith.constant dense<0.000000e+00> : vector<16x128xf32>
    %2 = tpu.matmul %0, %1, %cst {dimension_numbers = #tpu.dot_dimension_numbers<[1], [0], [0], [1], [0, 0, 1, 1], [], []>} : vector<16x128xf32>, vector<128x128xf32>, vector<16x128xf32> -> vector<16x128xf32>
    %c0_3 = arith.constant 0 : index
    %c0_4 = arith.constant 0 : index
    %3 = vector.load %arg3[%c0_3, %c0_4] : memref<1x128xf32, #tpu.memory_space<vmem>>, vector<1x128xf32>
    %4 = vector.broadcast %3 : vector<1x128xf32> to vector<16x128xf32>
    %5 = arith.addf %2, %4 : vector<16x128xf32>
    %c0_5 = arith.constant 0 : index
    %c0_6 = arith.constant 0 : index
    %6 = vector.load %arg4[%c0_5, %c0_6] : memref<16x1xf32, #tpu.memory_space<vmem>>, vector<16x1xf32>
    %7 = vector.broadcast %6 : vector<16x1xf32> to vector<16x128xf32>
    %8 = arith.mulf %5, %7 : vector<16x128xf32>
    %c0_7 = arith.constant 0 : index
    %c0_8 = arith.constant 0 : index
    %9 = vector.load %arg5[%c0_7, %c0_8] : memref<1x128xf32, #tpu.memory_space<vmem>>, vector<1x128xf32>
    %c0_9 = arith.constant 0 : index
    %c0_10 = arith.constant 0 : index
    %10 = vector.load %arg6[%c0_9, %c0_10] : memref<1x128xf32, #tpu.memory_space<vmem>>, vector<1x128xf32>
    %cst_11 = arith.constant dense<0.000000e+00> : vector<16xf32>
    %11 = vector.multi_reduction <add>, %8, %cst_11 [1] : vector<16x128xf32> to vector<16xf32>
    %12 = vector.shape_cast %11 : vector<16xf32> to vector<16x1xf32>
    %cst_12 = arith.constant 3.125000e-02 : f32
    %13 = vector.broadcast %cst_12 : f32 to vector<16x1xf32>
    %14 = arith.mulf %12, %13 : vector<16x1xf32>
    %15 = vector.broadcast %14 : vector<16x1xf32> to vector<16x128xf32>
    %16 = arith.subf %8, %15 : vector<16x128xf32>
    %17 = tpu.iota {dimensions = array<i32: 1>} : vector<1x128xi32>
    %c32_i32 = arith.constant 32 : i32
    %18 = vector.broadcast %c32_i32 : i32 to vector<1x128xi32>
    %19 = arith.cmpi slt, %17, %18 : vector<1x128xi32>
    %cst_13 = arith.constant 0.000000e+00 : f32
    %20 = vector.shape_cast %19 : vector<1x128xi1> to vector<1x128xi1>
    %21 = vector.broadcast %20 : vector<1x128xi1> to vector<16x128xi1>
    %22 = vector.broadcast %cst_13 : f32 to vector<16x128xf32>
    %23 = arith.select %21, %16, %22 : vector<16x128xi1>, vector<16x128xf32>
    %24 = arith.mulf %23, %23 : vector<16x128xf32>
    %cst_14 = arith.constant dense<0.000000e+00> : vector<16xf32>
    %25 = vector.multi_reduction <add>, %24, %cst_14 [1] : vector<16x128xf32> to vector<16xf32>
    %26 = vector.shape_cast %25 : vector<16xf32> to vector<16x1xf32>
    %cst_15 = arith.constant 3.125000e-02 : f32
    %27 = vector.broadcast %cst_15 : f32 to vector<16x1xf32>
    %28 = arith.mulf %26, %27 : vector<16x1xf32>
    %cst_16 = arith.constant 9.99999974E-6 : f32
    %29 = vector.broadcast %cst_16 : f32 to vector<16x1xf32>
    %30 = arith.addf %28, %29 : vector<16x1xf32>
    %31 = math.rsqrt %30 : vector<16x1xf32>
    %32 = vector.broadcast %31 : vector<16x1xf32> to vector<16x128xf32>
    %33 = arith.mulf %23, %32 : vector<16x128xf32>
    %34 = vector.broadcast %9 : vector<1x128xf32> to vector<16x128xf32>
    %35 = arith.mulf %33, %34 : vector<16x128xf32>
    %36 = vector.broadcast %10 : vector<1x128xf32> to vector<16x128xf32>
    %37 = arith.addf %35, %36 : vector<16x128xf32>
    %cst_17 = arith.constant 2.000000e-01 : f32
    %38 = vector.broadcast %cst_17 : f32 to vector<16x128xf32>
    %39 = arith.mulf %38, %37 : vector<16x128xf32>
    %40 = arith.maximumf %37, %39 : vector<16x128xf32>
    %c0_18 = arith.constant 0 : index
    %c0_19 = arith.constant 0 : index
    %41 = vector.load %arg7[%c0_18, %c0_19] : memref<16x128xf32, #tpu.memory_space<vmem>>, vector<16x128xf32>
    tpu.vector_store %arg7[%c0_18, %c0_19], %40 {strides = array<i32>} : memref<16x128xf32, #tpu.memory_space<vmem>>, vector<16x128xf32>,
    return
  }
  func.func @transform_0(%arg0: i32) -> (i32, i32) {
    %c0_i32 = arith.constant 0 : i32
    %c0_i32_0 = arith.constant 0 : i32
    return %arg0, %c0_i32 : i32, i32
  }
  func.func @transform_1(%arg0: i32) -> (i32, i32) {
    %c0_i32 = arith.constant 0 : i32
    %c0_i32_0 = arith.constant 0 : i32
    %c0_i32_1 = arith.constant 0 : i32
    return %c0_i32, %c0_i32_0 : i32, i32
  }
  func.func @transform_2(%arg0: i32) -> (i32, i32) {
    %c0_i32 = arith.constant 0 : i32
    %c0_i32_0 = arith.constant 0 : i32
    %c0_i32_1 = arith.constant 0 : i32
    return %c0_i32, %c0_i32_0 : i32, i32
  }
  func.func @transform_3(%arg0: i32) -> (i32, i32) {
    %c0_i32 = arith.constant 0 : i32
    %c0_i32_0 = arith.constant 0 : i32
    return %arg0, %c0_i32 : i32, i32
  }
  func.func @transform_4(%arg0: i32) -> (i32, i32) {
    %c0_i32 = arith.constant 0 : i32
    %c0_i32_0 = arith.constant 0 : i32
    %c0_i32_1 = arith.constant 0 : i32
    return %c0_i32, %c0_i32_0 : i32, i32
  }
  func.func @transform_5(%arg0: i32) -> (i32, i32) {
    %c0_i32 = arith.constant 0 : i32
    %c0_i32_0 = arith.constant 0 : i32
    %c0_i32_1 = arith.constant 0 : i32
    return %c0_i32, %c0_i32_0 : i32, i32
  }
  func.func @transform_6(%arg0: i32) -> (i32, i32) {
    %c0_i32 = arith.constant 0 : i32
    %c0_i32_0 = arith.constant 0 : i32
    return %arg0, %c0_i32 : i32, i32
  }
}

</mosaic_0001>

<bundles_post_ra>
// kernel: tpu_custom_call.1
= control target key start
LH: loop header
LB: loop body
LE: loop exit
PB: predicated region body
PF: predicated region fallthrough
CT: control target
= control target key end

     0   :  { %11 = vsyncpa [#allocation3], 0  ;;  %s459_s0 = inlined_call_operand.vmem [shape: f32[16,128], index: 0, kind: input, shape index: {}]   ;;  %s460_s1 = inlined_call_operand.hbm [shape: f32[128,128], index: 1, kind: input, shape index: {}]   ;;  %s461_s2 = inlined_call_operand.vmem [shape: f32[1,128], index: 2, kind: input, shape index: {}]   ;;  %s462_s3 = inlined_call_operand.vmem [shape: f32[16,1], index: 3, kind: input, shape index: {}]   ;;  %s463_s4 = inlined_call_operand.vmem [shape: f32[1,128], index: 4, kind: input, shape index: {}]   ;;  %s464_s5 = inlined_call_operand.vmem [shape: f32[1,128], index: 5, kind: input, shape index: {}]   ;;  %s465_s6 = inlined_call_operand.hbm [shape: f32[16,128], index: 6, kind: output, shape index: {}]  }
   0x1   :  { %12 = vsyncpa [#allocation4], 0  ;;  %s368_s21 = smov [#allocation2]   ;;  %s320_s25 = scalar_lea.hbm %s460_s1, 2048 }
   0x2   :  { %s20_s22 = sshll.u32 %s368_s21, 4  ;;  %p321_p0 = scmp.ne.s32.totalorder %s460_s1, %s320_s25  ;;  %s21_s22 = int_to_ptr.vmem [resolvable:$true] %s20_s22 }
   0x3   :  { %p324_p1 = scmp.lt.u32.totalorder %s320_s25, %s460_s1 }
   0x5   :  { %p326_p2 = pnand %p324_p1, %p321_p0 }
   0x7   :  { %329 = shalt.err (!%p326_p2)
}
   0x8   :  { %s330_s30 = scalar_lea.vmem %s21_s22, 2048  ;;  %p335_p4 = scmp.lt.s32.totalorder %s21_s22, %s21_s22 }
   0x9   :  { %p331_p3 = scmp.ne.s32.totalorder %s21_s22, %s330_s30  ;;  %p336_p5 = scmp.lt.s32.totalorder %s330_s30, %s330_s30 }
   0xb   :  { %p337_p6 = por %p336_p5, %p335_p4 }
   0xd   :  { %p338_p7 = pnand %p337_p6, %p331_p3 }
   0xf   :  { %341 = shalt.err (!%p338_p7)
}
  0x10   :  { %s369_s7 = smov 128   ;;  %s370_s8 = smov 8  }
  0x11   :  { %26 = dma.hbm_to_vmem [thread:$0]  %s460_s1, 2048, %s21_s22, [#allocation3], %s369_s7, %s369_s7, %s370_s8  }
  0x12   :  { %364 = dma.done.wait [#allocation3], 2048  }
  0x13   :  { %365 = vsyncadd [#allocation3], 4294965248  ;;  %v371_v0 = vmov 0   ;;  %v40_v1 = vld [vmem:[#allocation2] sm:$0xff]  ;;  %v41_v2 = vld [vmem:[#allocation2 + $0x8] sm:$0xff]  ;;  %v162_v38 = vlaneseq  ;;  %s372_s21 = smov [#allocation5]  }
  0x14   :  { %315 = vset.pattern.permute.xlu0 %v371_v0  ;;  %v42_v3 = vld [vmem:[#allocation2 + $0x10] sm:$0xff]  ;;  %v278_v4 = vpack.c.bf16 %v41_v2, %v40_v1  ;;  %v43_v5 = vld [vmem:[#allocation2 + $0x18] sm:$0xff]  ;;  %v44_v7 = vld [vmem:[#allocation2 + $0x20] sm:$0xff]  ;;  %s210_s22 = sshll.u32 %s372_s21, 4  ;;  %s211_s22 = int_to_ptr.vmem [resolvable:$true] %s210_s22 }
  0x15   :  { %v282_v6 = vpack.c.bf16 %v43_v5, %v42_v3  ;;  %v45_v8 = vld [vmem:[#allocation2 + $0x28] sm:$0xff]  ;;  %v38_v10 = vld [vmem:[%s459_s0] sm:$0xff]  ;;  %v46_v11 = vld [vmem:[#allocation2 + $0x30] sm:$0xff]  ;;  %v163_v39 = vand.u32 127, %v162_v38  ;;  %p347_p9 = scmp.lt.s32.totalorder %s211_s22, %s211_s22 }
  0x16   :  { %279 = vmatprep.subr.bf16.mxu0 %v278_v4  ;;  %v286_v9 = vpack.c.bf16 %v45_v8, %v44_v7  ;;  %v47_v12 = vld [vmem:[#allocation2 + $0x38] sm:$0xff]  ;;  %275 = vmatprep.mubr.f32.mxu0 %v38_v10  ;;  %v138_v13 = vld [vmem:[%s462_s3] sm:$0xff]  ;;  %v139_v14 = vld [vmem:[%s462_s3 + $0x8] sm:$0xff] }
  0x17   :  { %281 = vmatpush3.bf16.msra.mxu0 %v278_v4  ;;  %142 = vperm.xlu0 %315, %v138_v13   ;;  %v290_v15 = vpack.c.bf16 %v47_v12, %v46_v11  ;;  %v48_v16 = vld [vmem:[#allocation2 + $0x40] sm:$0xff]  ;;  %v49_v17 = vld [vmem:[#allocation2 + $0x48] sm:$0xff]  ;;  %v50_v19 = vld [vmem:[#allocation2 + $0x50] sm:$0xff]  ;;  %vm164_vm0 = vcmp.lt.s32.totalorder %v163_v39, 32 }
  0x18   :  { %283 = vmatprep.subr.bf16.mxu0 %v282_v6  ;;  %v294_v18 = vpack.c.bf16 %v49_v17, %v48_v16  ;;  %v51_v20 = vld [vmem:[#allocation2 + $0x58] sm:$0xff]  ;;  %v52_v22 = vld [vmem:[#allocation2 + $0x60] sm:$0xff]  ;;  %v53_v23 = vld [vmem:[#allocation2 + $0x68] sm:$0xff] }
  0x19   :  { %v298_v21 = vpack.c.bf16 %v51_v20, %v50_v19  ;;  %v302_v24 = vpack.c.bf16 %v53_v23, %v52_v22  ;;  %v54_v25 = vld [vmem:[#allocation2 + $0x70] sm:$0xff]  ;;  %v55_v26 = vld [vmem:[#allocation2 + $0x78] sm:$0xff]  ;;  %v39_v28 = vld [vmem:[%s459_s0 + $0x8] sm:$0xff] }
  0x1a   :  { %v306_v27 = vpack.c.bf16 %v55_v26, %v54_v25  ;;  %v222_v30 = vld [vmem:[%s461_s2] ss:$0 sm:$0xff] }
  0x1b   :  { %285 = vmatpush3.bf16.msra.mxu0 %v282_v6  ;;  %147 = vperm.xlu0 %315, %v139_v14   ;;  %v223_v57 = vld [vmem:[%s463_s4] ss:$0 sm:$0xff]  ;;  %s342_s4 = scalar_lea.vmem %s211_s22, 256 }
  0x1c   :  { %287 = vmatprep.subr.bf16.mxu0 %v286_v9  ;;  %v224_v59 = vld [vmem:[%s464_s5] ss:$0 sm:$0xff]  ;;  %p343_p8 = scmp.ne.s32.totalorder %s211_s22, %s342_s4  ;;  %p348_p10 = scmp.lt.s32.totalorder %s342_s4, %s342_s4 }
  0x1e   :  { %p349_p11 = por %p348_p10, %p347_p9 }
  0x1f   :  { %289 = vmatpush3.bf16.msra.mxu0 %v286_v9 }
  0x20   :  { %291 = vmatprep.subr.bf16.mxu0 %v290_v15  ;;  %p350_p12 = pnand %p349_p11, %p343_p8 }
  0x23   :  { %293 = vmatpush3.bf16.msra.mxu0 %v290_v15 }
  0x24   :  { %295 = vmatprep.subr.bf16.mxu0 %v294_v18 }
  0x27   :  { %297 = vmatpush3.bf16.msra.mxu0 %v294_v18 }
  0x28   :  { %299 = vmatprep.subr.bf16.mxu0 %v298_v21 }
  0x2b   :  { %301 = vmatpush3.bf16.msra.mxu0 %v298_v21 }
  0x2c   :  { %303 = vmatprep.subr.bf16.mxu0 %v302_v24 }
  0x2f   :  { %305 = vmatpush3.bf16.msra.mxu0 %v302_v24 }
  0x30   :  { %307 = vmatprep.subr.bf16.mxu0 %v306_v27 }
  0x33   :  { %309 = vmatpush3.bf16.msra.mxu0 %v306_v27 }
  0x36   :  { %276 = vmatmul.mubr.f32.vlgmr.msra.gmra.mrb[0].mxu0 %v39_v28 }
  0x96   :  { %v143_v29 = vpop.permute.xlu0 %142 }
  0x9a   :  { %v148_v36 = vpop.permute.xlu0 %147 }
 0x109   :  { %v277_v31 = vpop.f32.mrb[0].mxu0 }
 0x10a   :  { %v129_v32 = vpop.f32.mrb[1].mxu0  ;;  %v135_v34 = vadd.f32 %v277_v31, %v222_v30 }
 0x10b   :  { %v130_v33 = vadd.f32 %v222_v30, %v129_v32 }
 0x10c   :  { %v151_v37 = vmul.f32 %v148_v36, %v135_v34 }
 0x10d   :  { %v150_v35 = vmul.f32 %v143_v29, %v130_v33 }
 0x10f   :  { %154 = vadd.xlane.f32.xlu1 %v150_v35 }
 0x113   :  { %156 = vadd.xlane.f32.xlu1 %v151_v37 }
 0x19c   :  { %v155_v40 = vpop.xlane.xlu1 %154 }
 0x19d   :  { %v158_v41 = vmul.f32 0.03125, %v155_v40 }
 0x19f   :  { %v160_v42 = vsub.f32 %v150_v35, %v158_v41 }
 0x1a0   :  { %v157_v43 = vpop.xlane.xlu1 %156 }
 0x1a1   :  { %v159_v44 = vmul.f32 0.03125, %v157_v43  ;;  %v167_v45 = vsel %vm164_vm0, %v160_v42, 0.0 }
 0x1a2   :  { %v169_v46 = vmul.f32 %v167_v45, %v167_v45 }
 0x1a3   :  { %v161_v47 = vsub.f32 %v151_v37, %v159_v44 }
 0x1a4   :  { %171 = vadd.xlane.f32.xlu0 %v169_v46 }
 0x1a5   :  { %v168_v48 = vsel %vm164_vm0, %v161_v47, 0.0 }
 0x1a6   :  { %v170_v49 = vmul.f32 %v168_v48, %v168_v48 }
 0x1a8   :  { %173 = vadd.xlane.f32.xlu1 %v170_v49 }
 0x231   :  { %v172_v50 = vpop.xlane.xlu0 %171 }
 0x232   :  { %v175_v51 = vmul.f32 0.03125, %v172_v50 }
 0x234   :  { %v177_v52 = vadd.f32 1e-05, %v175_v51 }
 0x235   :  { %v174_v53 = vpop.xlane.xlu1 %173 }
 0x236   :  { %316 = vrsqrt.f32 %v177_v52  ;;  %v176_v54 = vmul.f32 0.03125, %v174_v53 }
 0x238   :  { %v178_v55 = vadd.f32 1e-05, %v176_v54 }
 0x23a   :  { %318 = vrsqrt.f32 %v178_v55 }
 0x240   :  { %v317_v56 = vpop.eup %316 }
 0x241   :  { %v181_v58 = vmul.f32 %v317_v56, %v167_v45 }
 0x243   :  { %v189_v60 = vmul.f32 %v223_v57, %v181_v58 }
 0x244   :  { %v319_v61 = vpop.eup %318 }
 0x245   :  { %v182_v62 = vmul.f32 %v319_v61, %v168_v48  ;;  %v197_v63 = vadd.f32 %v224_v59, %v189_v60 }
 0x247   :  { %v190_v0 = vmul.f32 %v223_v57, %v182_v62  ;;  %v199_v1 = vmul.f32 0.2, %v197_v63 }
 0x249   :  { %v198_v2 = vadd.f32 %v224_v59, %v190_v0  ;;  %v201_v3 = vmax.f32 %v197_v63, %v199_v1 }
 0x24b   :  { %v200_v4 = vmul.f32 0.2, %v198_v2  ;;  %203 = vst [vmem:[#allocation5] sm:$0xff] %v201_v3 }
 0x24d   :  { %v202_v5 = vmax.f32 %v198_v2, %v200_v4 }
 0x24f   :  { %204 = vst [vmem:[#allocation5 + $0x8] sm:$0xff] %v202_v5 }
 0x250   :  { %353 = shalt.err (!%p350_p12)
}
 0x251   :  { %s354_s24 = scalar_lea.hbm %s465_s6, 256 }
 0x252   :  { %p355_p13 = scmp.ne.s32.totalorder %s465_s6, %s354_s24  ;;  %p358_p0 = scmp.lt.u32.totalorder %s354_s24, %s465_s6 }
 0x254   :  { %p360_p1 = pnand %p358_p0, %p355_p13 }
 0x256   :  { %363 = shalt.err (!%p360_p1)
}
 0x257   :  { %216 = dma.vmem_to_hbm [thread:$0]  %s211_s22, 256, %s465_s6, [#allocation4], %s369_s7, %s369_s7, %s370_s8  }
 0x258   :  { %366 = dma.done.wait [#allocation4], 256  }
 0x259   :  { %367 = vsyncadd [#allocation4], 4294967040 }
 0x25a   :  { %220 = vsyncpa [#allocation3], 1 }
 0x25b   :  { %221 = vsyncpa [#allocation4], 1 }

</bundles_post_ra>
